<compile_context>
chip_gen: v7x
topology: tpu7x:2x2x1
jax: 0.10.0
libtpu: 0.0.40
codegen_flags: <defaults>
</compile_context>

<pallas_src>
import functools
import math

import jax
import jax.numpy as jnp
from jax.experimental import pallas as pl
from jax.experimental.pallas import tpu as pltpu


def _duma_kernel(xq_ref, xkv_ref,
                 wq_ref, wk_ref, wv_ref,
                 bq_ref, bk_ref, bv_ref,
                 wo_ref, bo_ref,
                 out_ref, *, batch, seq_q, seq_kv, num_heads, head_dim):
    # xq_ref : (B*Sq,  D)  flattened query-side rows for this attention block
    # xkv_ref: (B*Skv, D)  flattened key/value-side rows
    # w*_ref : (D, D)      PRE-TRANSPOSED projection weights (x @ w == x @ W.T)
    # b*_ref : (1, D)
    # out_ref: (B*Sq, D)   natural row layout (wrapper reshapes to (B, Sq, D))
    d_model = num_heads * head_dim
    scale = 1.0 / math.sqrt(head_dim)

    xq = xq_ref[...]
    xkv = xkv_ref[...]

    # QKV projections over all B*S rows at once (weights already transposed).
    q = jnp.dot(xq, wq_ref[...], preferred_element_type=jnp.float32) + bq_ref[...]
    k = jnp.dot(xkv, wk_ref[...], preferred_element_type=jnp.float32) + bk_ref[...]
    v = jnp.dot(xkv, wv_ref[...], preferred_element_type=jnp.float32) + bv_ref[...]
    q = q * scale

    # Attention batched over heads; static unroll over the (small) batch dim.
    ctx_rows = []
    for b in range(batch):
        qb = jnp.transpose(
            q[b * seq_q:(b + 1) * seq_q].reshape(seq_q, num_heads, head_dim),
            (1, 0, 2))                                            # (H, Sq, hd)
        kb = jnp.transpose(
            k[b * seq_kv:(b + 1) * seq_kv].reshape(seq_kv, num_heads, head_dim),
            (1, 0, 2))                                            # (H, Skv, hd)
        vb = jnp.transpose(
            v[b * seq_kv:(b + 1) * seq_kv].reshape(seq_kv, num_heads, head_dim),
            (1, 0, 2))                                            # (H, Skv, hd)

        s = jnp.einsum("hqd,hkd->hqk", qb, kb,
                       preferred_element_type=jnp.float32)        # (H, Sq, Skv)
        s = s - jnp.max(s, axis=-1, keepdims=True)
        p = jnp.exp(s)
        denom = jnp.sum(p, axis=-1, keepdims=True)
        p = p * pl.reciprocal(denom, approx=False)                # exact reciprocal (EUP)

        ctx_h = jnp.einsum("hqk,hkd->hqd", p, vb,
                           preferred_element_type=jnp.float32)    # (H, Sq, hd)
        ctx_rows.append(jnp.transpose(ctx_h, (1, 0, 2)).reshape(seq_q, d_model))

    ctx = jnp.concatenate(ctx_rows, axis=0) if batch > 1 else ctx_rows[0]  # (B*Sq, D)

    # Output projection over all rows at once; natural-layout store (no relayout).
    out = jnp.dot(ctx, wo_ref[...], preferred_element_type=jnp.float32) + bo_ref[...]
    out_ref[...] = out.astype(out_ref.dtype)


@functools.partial(jax.jit, static_argnames=("num_heads",))
def v_duma_layer(qr_representation, v_representation, params_qr, params_v, num_heads):
    """Fused V_DUMA layer.  Returns (enc_output_qr, enc_output_v), both (B, S, D)."""
    B, S_qr, D = qr_representation.shape
    _, S_v, _ = v_representation.shape
    # TODO(synk): fused path assumes equal qr / v sequence lengths (true for this layer's usage).
    assert S_qr == S_v, "fused V_DUMA kernel requires equal sequence lengths"
    S = S_qr
    H = num_heads
    hd = D // H

    # Stack the two cross-attention problems along a leading axis of size 2:
    #   block 0 (attn_qr): query = v_rep , key/value = qr_rep , weights = params_qr
    #   block 1 (attn_v ): query = qr_rep, key/value = v_rep  , weights = params_v
    x_q = jnp.stack([v_representation, qr_representation]).reshape(2, B * S, D)
    x_kv = jnp.stack([qr_representation, v_representation]).reshape(2, B * S, D)

    (wq0, wk0, wv0, bq0, bk0, bv0, wo0, bo0) = params_qr
    (wq1, wk1, wv1, bq1, bk1, bv1, wo1, bo1) = params_v

    def stack_wt(a, b):  # pre-transpose weights in the wrapper (free layout plumbing)
        return jnp.stack([a.T, b.T])

    def stack_b(a, b):
        return jnp.stack([a, b]).reshape(2, 1, D)

    wq_t = stack_wt(wq0, wq1)
    wk_t = stack_wt(wk0, wk1)
    wv_t = stack_wt(wv0, wv1)
    wo_t = stack_wt(wo0, wo1)
    bq_s = stack_b(bq0, bq1)
    bk_s = stack_b(bk0, bk1)
    bv_s = stack_b(bv0, bv1)
    bo_s = stack_b(bo0, bo1)

    kernel = functools.partial(_duma_kernel, batch=B, seq_q=S, seq_kv=S,
                               num_heads=H, head_dim=hd)

    act_spec = pl.BlockSpec((None, B * S, D), lambda i: (i, 0, 0))
    w_spec = pl.BlockSpec((None, D, D), lambda i: (i, 0, 0))
    b_spec = pl.BlockSpec((None, 1, D), lambda i: (i, 0, 0))

    out = pl.pallas_call(
        kernel,
        out_shape=jax.ShapeDtypeStruct((2, B * S, D), qr_representation.dtype),
        grid=(2,),
        in_specs=[
            act_spec, act_spec,
            w_spec, w_spec, w_spec,
            b_spec, b_spec, b_spec,
            w_spec, b_spec,
        ],
        out_specs=pl.BlockSpec((None, B * S, D), lambda i: (i, 0, 0)),
        compiler_params=pltpu.CompilerParams(dimension_semantics=("parallel",)),
    )(x_q, x_kv, wq_t, wk_t, wv_t, bq_s, bk_s, bv_s, wo_t, bo_s)

    out = out.reshape(2, B, S, D)
    return out[0], out[1]


def make_mha_params(key, d_model):
    """Deterministic synthetic parameters (same shapes as nn.MultiheadAttention)."""
    k1, k2, k3 = jax.random.split(key, 3)
    in_proj_weight = 0.05 * jax.random.normal(k1, (3 * d_model, d_model), jnp.float32)
    in_proj_bias = 0.05 * jax.random.normal(k2, (3 * d_model,), jnp.float32)
    out_proj_weight = 0.05 * jax.random.normal(k3, (d_model, d_model), jnp.float32)
    out_proj_bias = jnp.zeros((d_model,), jnp.float32)
    wq, wk, wv = jnp.split(in_proj_weight, 3, axis=0)
    bq, bk, bv = jnp.split(in_proj_bias, 3, axis=0)
    return (wq, wk, wv, bq, bk, bv, out_proj_weight, out_proj_bias)


# ---------- pure-JAX reference (for sanity check) ----------
def mha_ref(query, key_value, params, num_heads):
    wq, wk, wv, bq, bk, bv, wo, bo = params
    B, Sq, D = query.shape
    _, Skv, _ = key_value.shape
    hd = D // num_heads
    q = query @ wq.T + bq
    k = key_value @ wk.T + bk
    v = key_value @ wv.T + bv
    q = q.reshape(B, Sq, num_heads, hd).transpose(0, 2, 1, 3) / math.sqrt(hd)
    k = k.reshape(B, Skv, num_heads, hd).transpose(0, 2, 1, 3)
    v = v.reshape(B, Skv, num_heads, hd).transpose(0, 2, 1, 3)
    s = jnp.einsum("bhqd,bhkd->bhqk", q, k)
    p = jax.nn.softmax(s, axis=-1)
    ctx = jnp.einsum("bhqk,bhkd->bhqd", p, v)
    ctx = ctx.transpose(0, 2, 1, 3).reshape(B, Sq, D)
    return ctx @ wo.T + bo


if __name__ == "__main__":
    B, S, D, H = 2, 8, 32, 4

    key = jax.random.PRNGKey(0)
    k_qr, k_v, k_pqr, k_pv = jax.random.split(key, 4)
    qr_rep = jax.random.normal(k_qr, (B, S, D), jnp.float32)
    v_rep = jax.random.normal(k_v, (B, S, D), jnp.float32)

    params_qr = make_mha_params(k_pqr, D)
    params_v = make_mha_params(k_pv, D)

    enc_qr, enc_v = v_duma_layer(qr_rep, v_rep, params_qr, params_v, num_heads=H)
    enc_qr = jax.block_until_ready(enc_qr)
    enc_v = jax.block_until_ready(enc_v)

    ref_qr = mha_ref(v_rep, qr_rep, params_qr, H)
    ref_v = mha_ref(qr_rep, v_rep, params_v, H)
    assert enc_qr.shape == (B, S, D) and enc_v.shape == (B, S, D)
    assert jnp.allclose(enc_qr, ref_qr, atol=1e-4, rtol=1e-4)
    assert jnp.allclose(enc_v, ref_v, atol=1e-4, rtol=1e-4)

    print("KERNEL_OK")
</pallas_src>

<mosaic_0001>
module attributes {stable_mosaic.version = 11 : i64} {
  func.func @_duma_kernel(%arg0: i32, %arg1: memref<1x16x32xf32, #tpu.memory_space<vmem>>, %arg2: memref<1x16x32xf32, #tpu.memory_space<vmem>>, %arg3: memref<1x32x32xf32, #tpu.memory_space<vmem>>, %arg4: memref<1x32x32xf32, #tpu.memory_space<vmem>>, %arg5: memref<1x32x32xf32, #tpu.memory_space<vmem>>, %arg6: memref<1x1x32xf32, #tpu.memory_space<vmem>>, %arg7: memref<1x1x32xf32, #tpu.memory_space<vmem>>, %arg8: memref<1x1x32xf32, #tpu.memory_space<vmem>>, %arg9: memref<1x32x32xf32, #tpu.memory_space<vmem>>, %arg10: memref<1x1x32xf32, #tpu.memory_space<vmem>>, %arg11: memref<1x16x32xf32, #tpu.memory_space<vmem>>) attributes {dimension_semantics = [#tpu.dimension_semantics<parallel>], iteration_bounds = array<i64: 2>, scalar_prefetch = 0 : i64, scratch_operands = 0 : i64, tpu.core_type = #tpu.core_type<tc>, window_params = [{transform_indices = @transform_0, window_bounds = array<i64: 1, 16, 32>}, {transform_indices = @transform_1, window_bounds = array<i64: 1, 16, 32>}, {transform_indices = @transform_2, window_bounds = array<i64: 1, 32, 32>}, {transform_indices = @transform_3, window_bounds = array<i64: 1, 32, 32>}, {transform_indices = @transform_4, window_bounds = array<i64: 1, 32, 32>}, {transform_indices = @transform_5, window_bounds = array<i64: 1, 1, 32>}, {transform_indices = @transform_6, window_bounds = array<i64: 1, 1, 32>}, {transform_indices = @transform_7, window_bounds = array<i64: 1, 1, 32>}, {transform_indices = @transform_8, window_bounds = array<i64: 1, 32, 32>}, {transform_indices = @transform_9, window_bounds = array<i64: 1, 1, 32>}, {transform_indices = @transform_10, window_bounds = array<i64: 1, 16, 32>}]} {
    %c0 = arith.constant 0 : index
    %c0_0 = arith.constant 0 : index
    %c0_1 = arith.constant 0 : index
    %0 = vector.load %arg1[%c0, %c0_0, %c0_1] : memref<1x16x32xf32, #tpu.memory_space<vmem>>, vector<1x16x32xf32>
    %1 = vector.shape_cast %0 : vector<1x16x32xf32> to vector<16x32xf32>
    %c0_2 = arith.constant 0 : index
    %c0_3 = arith.constant 0 : index
    %c0_4 = arith.constant 0 : index
    %2 = vector.load %arg2[%c0_2, %c0_3, %c0_4] : memref<1x16x32xf32, #tpu.memory_space<vmem>>, vector<1x16x32xf32>
    %3 = vector.shape_cast %2 : vector<1x16x32xf32> to vector<16x32xf32>
    %c0_5 = arith.constant 0 : index
    %c0_6 = arith.constant 0 : index
    %c0_7 = arith.constant 0 : index
    %4 = vector.load %arg3[%c0_5, %c0_6, %c0_7] : memref<1x32x32xf32, #tpu.memory_space<vmem>>, vector<1x32x32xf32>
    %5 = vector.shape_cast %4 : vector<1x32x32xf32> to vector<32x32xf32>
    %cst = arith.constant dense<0.000000e+00> : vector<16x32xf32>
    %6 = tpu.matmul %1, %5, %cst {dimension_numbers = #tpu.dot_dimension_numbers<[1], [0], [0], [1], [0, 0, 1, 1], [], []>} : vector<16x32xf32>, vector<32x32xf32>, vector<16x32xf32> -> vector<16x32xf32>
    %c0_8 = arith.constant 0 : index
    %c0_9 = arith.constant 0 : index
    %c0_10 = arith.constant 0 : index
    %7 = vector.load %arg6[%c0_8, %c0_9, %c0_10] : memref<1x1x32xf32, #tpu.memory_space<vmem>>, vector<1x1x32xf32>
    %8 = vector.shape_cast %7 : vector<1x1x32xf32> to vector<1x32xf32>
    %9 = vector.broadcast %8 : vector<1x32xf32> to vector<16x32xf32>
    %10 = arith.addf %6, %9 : vector<16x32xf32>
    %c0_11 = arith.constant 0 : index
    %c0_12 = arith.constant 0 : index
    %c0_13 = arith.constant 0 : index
    %11 = vector.load %arg4[%c0_11, %c0_12, %c0_13] : memref<1x32x32xf32, #tpu.memory_space<vmem>>, vector<1x32x32xf32>
    %12 = vector.shape_cast %11 : vector<1x32x32xf32> to vector<32x32xf32>
    %cst_14 = arith.constant dense<0.000000e+00> : vector<16x32xf32>
    %13 = tpu.matmul %3, %12, %cst_14 {dimension_numbers = #tpu.dot_dimension_numbers<[1], [0], [0], [1], [0, 0, 1, 1], [], []>} : vector<16x32xf32>, vector<32x32xf32>, vector<16x32xf32> -> vector<16x32xf32>
    %c0_15 = arith.constant 0 : index
    %c0_16 = arith.constant 0 : index
    %c0_17 = arith.constant 0 : index
    %14 = vector.load %arg7[%c0_15, %c0_16, %c0_17] : memref<1x1x32xf32, #tpu.memory_space<vmem>>, vector<1x1x32xf32>
    %15 = vector.shape_cast %14 : vector<1x1x32xf32> to vector<1x32xf32>
    %16 = vector.broadcast %15 : vector<1x32xf32> to vector<16x32xf32>
    %17 = arith.addf %13, %16 : vector<16x32xf32>
    %c0_18 = arith.constant 0 : index
    %c0_19 = arith.constant 0 : index
    %c0_20 = arith.constant 0 : index
    %18 = vector.load %arg5[%c0_18, %c0_19, %c0_20] : memref<1x32x32xf32, #tpu.memory_space<vmem>>, vector<1x32x32xf32>
    %19 = vector.shape_cast %18 : vector<1x32x32xf32> to vector<32x32xf32>
    %cst_21 = arith.constant dense<0.000000e+00> : vector<16x32xf32>
    %20 = tpu.matmul %3, %19, %cst_21 {dimension_numbers = #tpu.dot_dimension_numbers<[1], [0], [0], [1], [0, 0, 1, 1], [], []>} : vector<16x32xf32>, vector<32x32xf32>, vector<16x32xf32> -> vector<16x32xf32>
    %c0_22 = arith.constant 0 : index
    %c0_23 = arith.constant 0 : index
    %c0_24 = arith.constant 0 : index
    %21 = vector.load %arg8[%c0_22, %c0_23, %c0_24] : memref<1x1x32xf32, #tpu.memory_space<vmem>>, vector<1x1x32xf32>
    %22 = vector.shape_cast %21 : vector<1x1x32xf32> to vector<1x32xf32>
    %23 = vector.broadcast %22 : vector<1x32xf32> to vector<16x32xf32>
    %24 = arith.addf %20, %23 : vector<16x32xf32>
    %cst_25 = arith.constant 0.353553385 : f32
    %25 = vector.broadcast %cst_25 : f32 to vector<16x32xf32>
    %26 = arith.mulf %10, %25 : vector<16x32xf32>
    %27 = vector.extract_strided_slice %26 {offsets = [0, 0], sizes = [8, 32], strides = [1, 1]} : vector<16x32xf32> to vector<8x32xf32>
    %28 = vector.shape_cast %27 : vector<8x32xf32> to vector<8x4x8xf32>
    %29 = tpu.transpose %28, [1, 0, 2] : vector<8x4x8xf32> -> vector<4x8x8xf32>
    %30 = vector.extract_strided_slice %17 {offsets = [0, 0], sizes = [8, 32], strides = [1, 1]} : vector<16x32xf32> to vector<8x32xf32>
    %31 = vector.shape_cast %30 : vector<8x32xf32> to vector<8x4x8xf32>
    %32 = tpu.transpose %31, [1, 0, 2] : vector<8x4x8xf32> -> vector<4x8x8xf32>
    %33 = vector.extract_strided_slice %24 {offsets = [0, 0], sizes = [8, 32], strides = [1, 1]} : vector<16x32xf32> to vector<8x32xf32>
    %34 = vector.shape_cast %33 : vector<8x32xf32> to vector<8x4x8xf32>
    %35 = tpu.transpose %34, [1, 0, 2] : vector<8x4x8xf32> -> vector<4x8x8xf32>
    "tpu.trace_start"() <{level = 10 : i32, message = "hqd,hkd->hqk"}> : () -> ()
    %cst_26 = arith.constant dense<0.000000e+00> : vector<4x8x8xf32>
    %36 = tpu.matmul %29, %32, %cst_26 {dimension_numbers = #tpu.dot_dimension_numbers<[2], [2], [1], [1], [0, 0, 0, 1, 1, 1], [0], [0]>} : vector<4x8x8xf32>, vector<4x8x8xf32>, vector<4x8x8xf32> -> vector<4x8x8xf32>
    "tpu.trace_stop"() : () -> ()
    %cst_27 = arith.constant dense<0xFF800000> : vector<4x8xf32>
    %37 = vector.multi_reduction <maximumf>, %36, %cst_27 [2] : vector<4x8x8xf32> to vector<4x8xf32>
    %38 = vector.shape_cast %37 : vector<4x8xf32> to vector<4x8x1xf32>
    %39 = vector.broadcast %38 : vector<4x8x1xf32> to vector<4x8x8xf32>
    %40 = arith.subf %36, %39 : vector<4x8x8xf32>
    %41 = math.exp %40 : vector<4x8x8xf32>
    %cst_28 = arith.constant dense<0.000000e+00> : vector<4x8xf32>
    %42 = vector.multi_reduction <add>, %41, %cst_28 [2] : vector<4x8x8xf32> to vector<4x8xf32>
    %43 = vector.shape_cast %42 : vector<4x8xf32> to vector<4x8x1xf32>
    %44 = tpu.reciprocal %43 : vector<4x8x1xf32> -> vector<4x8x1xf32>
    %45 = vector.broadcast %44 : vector<4x8x1xf32> to vector<4x8x8xf32>
    %46 = arith.mulf %41, %45 : vector<4x8x8xf32>
    "tpu.trace_start"() <{level = 10 : i32, message = "hqk,hkd->hqd"}> : () -> ()
    %cst_29 = arith.constant dense<0.000000e+00> : vector<4x8x8xf32>
    %47 = tpu.matmul %46, %35, %cst_29 {dimension_numbers = #tpu.dot_dimension_numbers<[2], [1], [1], [2], [0, 0, 0, 1, 1, 2], [0], [0]>} : vector<4x8x8xf32>, vector<4x8x8xf32>, vector<4x8x8xf32> -> vector<4x8x8xf32>
    "tpu.trace_stop"() : () -> ()
    %48 = tpu.transpose %47, [1, 0, 2] : vector<4x8x8xf32> -> vector<8x4x8xf32>
    %49 = vector.shape_cast %48 : vector<8x4x8xf32> to vector<8x32xf32>
    %50 = vector.extract_strided_slice %26 {offsets = [8, 0], sizes = [8, 32], strides = [1, 1]} : vector<16x32xf32> to vector<8x32xf32>
    %51 = vector.shape_cast %50 : vector<8x32xf32> to vector<8x4x8xf32>
    %52 = tpu.transpose %51, [1, 0, 2] : vector<8x4x8xf32> -> vector<4x8x8xf32>
    %53 = vector.extract_strided_slice %17 {offsets = [8, 0], sizes = [8, 32], strides = [1, 1]} : vector<16x32xf32> to vector<8x32xf32>
    %54 = vector.shape_cast %53 : vector<8x32xf32> to vector<8x4x8xf32>
    %55 = tpu.transpose %54, [1, 0, 2] : vector<8x4x8xf32> -> vector<4x8x8xf32>
    %56 = vector.extract_strided_slice %24 {offsets = [8, 0], sizes = [8, 32], strides = [1, 1]} : vector<16x32xf32> to vector<8x32xf32>
    %57 = vector.shape_cast %56 : vector<8x32xf32> to vector<8x4x8xf32>
    %58 = tpu.transpose %57, [1, 0, 2] : vector<8x4x8xf32> -> vector<4x8x8xf32>
    "tpu.trace_start"() <{level = 10 : i32, message = "hqd,hkd->hqk"}> : () -> ()
    %cst_30 = arith.constant dense<0.000000e+00> : vector<4x8x8xf32>
    %59 = tpu.matmul %52, %55, %cst_30 {dimension_numbers = #tpu.dot_dimension_numbers<[2], [2], [1], [1], [0, 0, 0, 1, 1, 1], [0], [0]>} : vector<4x8x8xf32>, vector<4x8x8xf32>, vector<4x8x8xf32> -> vector<4x8x8xf32>
    "tpu.trace_stop"() : () -> ()
    %cst_31 = arith.constant dense<0xFF800000> : vector<4x8xf32>
    %60 = vector.multi_reduction <maximumf>, %59, %cst_31 [2] : vector<4x8x8xf32> to vector<4x8xf32>
    %61 = vector.shape_cast %60 : vector<4x8xf32> to vector<4x8x1xf32>
    %62 = vector.broadcast %61 : vector<4x8x1xf32> to vector<4x8x8xf32>
    %63 = arith.subf %59, %62 : vector<4x8x8xf32>
    %64 = math.exp %63 : vector<4x8x8xf32>
    %cst_32 = arith.constant dense<0.000000e+00> : vector<4x8xf32>
    %65 = vector.multi_reduction <add>, %64, %cst_32 [2] : vector<4x8x8xf32> to vector<4x8xf32>
    %66 = vector.shape_cast %65 : vector<4x8xf32> to vector<4x8x1xf32>
    %67 = tpu.reciprocal %66 : vector<4x8x1xf32> -> vector<4x8x1xf32>
    %68 = vector.broadcast %67 : vector<4x8x1xf32> to vector<4x8x8xf32>
    %69 = arith.mulf %64, %68 : vector<4x8x8xf32>
    "tpu.trace_start"() <{level = 10 : i32, message = "hqk,hkd->hqd"}> : () -> ()
    %cst_33 = arith.constant dense<0.000000e+00> : vector<4x8x8xf32>
    %70 = tpu.matmul %69, %58, %cst_33 {dimension_numbers = #tpu.dot_dimension_numbers<[2], [1], [1], [2], [0, 0, 0, 1, 1, 2], [0], [0]>} : vector<4x8x8xf32>, vector<4x8x8xf32>, vector<4x8x8xf32> -> vector<4x8x8xf32>
    "tpu.trace_stop"() : () -> ()
    %71 = tpu.transpose %70, [1, 0, 2] : vector<4x8x8xf32> -> vector<8x4x8xf32>
    %72 = vector.shape_cast %71 : vector<8x4x8xf32> to vector<8x32xf32>
    %73 = tpu.concatenate %49, %72 in 0 : vector<8x32xf32>, vector<8x32xf32> -> vector<16x32xf32>
    %c0_34 = arith.constant 0 : index
    %c0_35 = arith.constant 0 : index
    %c0_36 = arith.constant 0 : index
    %74 = vector.load %arg9[%c0_34, %c0_35, %c0_36] : memref<1x32x32xf32, #tpu.memory_space<vmem>>, vector<1x32x32xf32>
    %75 = vector.shape_cast %74 : vector<1x32x32xf32> to vector<32x32xf32>
    %cst_37 = arith.constant dense<0.000000e+00> : vector<16x32xf32>
    %76 = tpu.matmul %73, %75, %cst_37 {dimension_numbers = #tpu.dot_dimension_numbers<[1], [0], [0], [1], [0, 0, 1, 1], [], []>} : vector<16x32xf32>, vector<32x32xf32>, vector<16x32xf32> -> vector<16x32xf32>
    %c0_38 = arith.constant 0 : index
    %c0_39 = arith.constant 0 : index
    %c0_40 = arith.constant 0 : index
    %77 = vector.load %arg10[%c0_38, %c0_39, %c0_40] : memref<1x1x32xf32, #tpu.memory_space<vmem>>, vector<1x1x32xf32>
    %78 = vector.shape_cast %77 : vector<1x1x32xf32> to vector<1x32xf32>
    %79 = vector.broadcast %78 : vector<1x32xf32> to vector<16x32xf32>
    %80 = arith.addf %76, %79 : vector<16x32xf32>
    %c0_41 = arith.constant 0 : index
    %c0_42 = arith.constant 0 : index
    %c0_43 = arith.constant 0 : index
    %81 = vector.load %arg11[%c0_41, %c0_42, %c0_43] : memref<1x16x32xf32, #tpu.memory_space<vmem>>, vector<1x16x32xf32>
    %82 = vector.shape_cast %81 : vector<1x16x32xf32> to vector<16x32xf32>
    %83 = vector.shape_cast %80 : vector<16x32xf32> to vector<1x16x32xf32>
    tpu.vector_store %arg11[%c0_41, %c0_42, %c0_43], %83 {strides = array<i32>} : memref<1x16x32xf32, #tpu.memory_space<vmem>>, vector<1x16x32xf32>,
    return
  }
  func.func @transform_0(%arg0: i32) -> (i32, i32, i32) {
    %c0_i32 = arith.constant 0 : i32
    %c0_i32_0 = arith.constant 0 : i32
    %c0_i32_1 = arith.constant 0 : i32
    return %arg0, %c0_i32, %c0_i32_0 : i32, i32, i32
  }
  func.func @transform_1(%arg0: i32) -> (i32, i32, i32) {
    %c0_i32 = arith.constant 0 : i32
    %c0_i32_0 = arith.constant 0 : i32
    %c0_i32_1 = arith.constant 0 : i32
    return %arg0, %c0_i32, %c0_i32_0 : i32, i32, i32
  }
  func.func @transform_2(%arg0: i32) -> (i32, i32, i32) {
    %c0_i32 = arith.constant 0 : i32
    %c0_i32_0 = arith.constant 0 : i32
    %c0_i32_1 = arith.constant 0 : i32
    return %arg0, %c0_i32, %c0_i32_0 : i32, i32, i32
  }
  func.func @transform_3(%arg0: i32) -> (i32, i32, i32) {
    %c0_i32 = arith.constant 0 : i32
    %c0_i32_0 = arith.constant 0 : i32
    %c0_i32_1 = arith.constant 0 : i32
    return %arg0, %c0_i32, %c0_i32_0 : i32, i32, i32
  }
  func.func @transform_4(%arg0: i32) -> (i32, i32, i32) {
    %c0_i32 = arith.constant 0 : i32
    %c0_i32_0 = arith.constant 0 : i32
    %c0_i32_1 = arith.constant 0 : i32
    return %arg0, %c0_i32, %c0_i32_0 : i32, i32, i32
  }
  func.func @transform_5(%arg0: i32) -> (i32, i32, i32) {
    %c0_i32 = arith.constant 0 : i32
    %c0_i32_0 = arith.constant 0 : i32
    %c0_i32_1 = arith.constant 0 : i32
    return %arg0, %c0_i32, %c0_i32_0 : i32, i32, i32
  }
  func.func @transform_6(%arg0: i32) -> (i32, i32, i32) {
    %c0_i32 = arith.constant 0 : i32
    %c0_i32_0 = arith.constant 0 : i32
    %c0_i32_1 = arith.constant 0 : i32
    return %arg0, %c0_i32, %c0_i32_0 : i32, i32, i32
  }
  func.func @transform_7(%arg0: i32) -> (i32, i32, i32) {
    %c0_i32 = arith.constant 0 : i32
    %c0_i32_0 = arith.constant 0 : i32
    %c0_i32_1 = arith.constant 0 : i32
    return %arg0, %c0_i32, %c0_i32_0 : i32, i32, i32
  }
  func.func @transform_8(%arg0: i32) -> (i32, i32, i32) {
    %c0_i32 = arith.constant 0 : i32
    %c0_i32_0 = arith.constant 0 : i32
    %c0_i32_1 = arith.constant 0 : i32
    return %arg0, %c0_i32, %c0_i32_0 : i32, i32, i32
  }
  func.func @transform_9(%arg0: i32) -> (i32, i32, i32) {
    %c0_i32 = arith.constant 0 : i32
    %c0_i32_0 = arith.constant 0 : i32
    %c0_i32_1 = arith.constant 0 : i32
    return %arg0, %c0_i32, %c0_i32_0 : i32, i32, i32
  }
  func.func @transform_10(%arg0: i32) -> (i32, i32, i32) {
    %c0_i32 = arith.constant 0 : i32
    %c0_i32_0 = arith.constant 0 : i32
    %c0_i32_1 = arith.constant 0 : i32
    return %arg0, %c0_i32, %c0_i32_0 : i32, i32, i32
  }
}

</mosaic_0001>

<bundles_post_ra>
// kernel: v_duma_layer.1
= control target key start
LH: loop header
LB: loop body
LE: loop exit
PB: predicated region body
PF: predicated region fallthrough
CT: control target
= control target key end

     0   :  { %s3914_s13 = smov 0   ;;  %s4324_s0 = inlined_call_operand.vmem [shape: f32[2,16,32], index: 0, kind: input, shape index: {}]   ;;  %s4325_s1 = inlined_call_operand.vmem [shape: f32[2,16,32], index: 1, kind: input, shape index: {}]   ;;  %s4326_s2 = inlined_call_operand.vmem [shape: f32[2,32,32], index: 2, kind: input, shape index: {}]   ;;  %s4327_s3 = inlined_call_operand.vmem [shape: f32[2,32,32], index: 3, kind: input, shape index: {}]   ;;  %s4328_s4 = inlined_call_operand.vmem [shape: f32[2,32,32], index: 4, kind: input, shape index: {}]   ;;  %s4329_s5 = inlined_call_operand.vmem [shape: f32[2,1,32], index: 5, kind: input, shape index: {}]   ;;  %s4330_s6 = inlined_call_operand.vmem [shape: f32[2,1,32], index: 6, kind: input, shape index: {}]   ;;  %s4331_s7 = inlined_call_operand.vmem [shape: f32[2,1,32], index: 7, kind: input, shape index: {}]   ;;  %s4332_s8 = inlined_call_operand.vmem [shape: f32[2,32,32], index: 8, kind: input, shape index: {}]   ;;  %s4333_s9 = inlined_call_operand.vmem [shape: f32[2,1,32], index: 9, kind: input, shape index: {}]   ;;  %s4334_s10 = inlined_call_operand.vmem [shape: f32[2,16,32], index: 10, kind: output, shape index: {}]  }
   0x1 LB: > { %s3499_s14 = sadd.s32 4294967295, %s3847_s13   ;;  %p3503_p0 = scmp.ge.s32.totalorder %s3847_s13, 1  ;;  %s3847_s13 = sphi %s3914_s13, %s20_s13  }
   0x2   : > { %p394_p1 = scmp.lt.s32.totalorder %s3847_s13, 3 }
   0x4   : > { %p395_p2 = pnand %p3503_p0, %p394_p1 }
   0x5   : > { %p469_p3 = scmp.lt.s32.totalorder (!%p395_p2), %s3499_s14, 1  ;;  %vm531_vm0 = vcmask (!%p395_p2), 261120   ;;  %s3850_s20 = smov (!%p395_p2), 120   ;;  %v3852_v27 = vmov (!%p395_p2), 0.0   ;;  %vm3853_vm1 = vmmov (!%p395_p2), 0   ;;  %v808_v36 = vlaneseq (!%p395_p2) }
   0x6   : > { %398 = sbr.rel (%p395_p2) target bundleno = 2092 (0x82c), region = 60  ;;  %s3851_s21 = smov (!%p395_p2), 112   ;;  %v3854_v34 = vmov (!%p395_p2), 1983009808   ;;  %v3855_v37 = vmov (!%p395_p2), 1934713408  }
   0x7   : > { %v806_v35 = vunpack.c.l.s4 (!%p395_p2), %v3854_v34  ;;  %v838_v38 = vunpack.c.l.s4 (!%p395_p2), %v3855_v37  ;;  %v809_v40 = vshrl.u32 (!%p395_p2), %v808_v36, 7  ;;  %vm1231_vm2 = vcmask (!%p395_p2), 64512   ;;  %s3857_s29 = smov (!%p395_p2), 16   ;;  %s3858_s30 = smov (!%p395_p2), 24  }
   0x8   : > { %vm2021_vm3 = vcmask (!%p395_p2), 130048   ;;  %vm2023_vm4 = vcmask (!%p395_p2), 195584  }
   0x9   : > { %v807_v39 = vunpack.c.0.s8 (!%p395_p2), %v806_v35  ;;  %v839_v43 = vunpack.c.0.s8 (!%p395_p2), %v838_v38 }
   0xb   : > { %v3980_v44 = vsub.s32 (!%p395_p2), %v807_v39, %v809_v40  ;;  %v3982_v51 = vsub.s32 (!%p395_p2), %v839_v43, %v809_v40 }
   0xd   : > { %s4336_s14 = smov (!%p469_p3, %s3499_s14), 1 }
   0xe   : > { %s3925_s15 = sshll.u32 %s4336_s14, 5  ;;  %s3928_s16 = sshll.u32 %s4336_s14, 4 }
   0xf   : > { %s488_s19 = scalar_lea.vmem %s4327_s3, %s3925_s15  ;;  %s483_s22 = scalar_lea.vmem %s4326_s2, %s3925_s15 }
  0x10   : > { %v613_v0 = vld [vmem:[%s488_s19] sm:$0xff]  ;;  %v614_v1 = vld [vmem:[%s488_s19 + $0x8] sm:$0xff]  ;;  %s478_s25 = scalar_lea.vmem %s4325_s1, %s3928_s16  ;;  %v615_v5 = vld [vmem:[%s488_s19 + $0x10] sm:$0xff]  ;;  %s473_s28 = scalar_lea.vmem %s4324_s0, %s3928_s16 }
  0x11   : > { %v520_v2 = vld [vmem:[%s483_s22] sm:$0xff]  ;;  %v3767_v3 = vpack.c.bf16 %v614_v1, %v613_v0  ;;  %v521_v4 = vld [vmem:[%s483_s22 + $0x8] sm:$0xff]  ;;  %v616_v6 = vld [vmem:[%s488_s19 + $0x18] sm:$0xff]  ;;  %s499_s11 = scalar_lea.vmem %s4330_s6, %s4336_s14  ;;  %s496_s18 = scalar_lea.vmem %s4329_s5, %s4336_s14 }
  0x12   : > { %v3759_v7 = vpack.c.bf16 %v521_v4, %v520_v2  ;;  %v3771_v8 = vpack.c.bf16 %v616_v6, %v615_v5  ;;  %v522_v9 = vld [vmem:[%s483_s22 + $0x10] sm:$0xff]  ;;  %v523_v10 = vld [vmem:[%s483_s22 + $0x18] sm:$0xff]  ;;  %v518_v11 = vld [vmem:[%s478_s25] sm:$0xff]  ;;  %s3849_s19 = smov 104   ;;  %s493_s24 = scalar_lea.vmem %s4328_s4, %s3925_s15 }
  0x13   : > { %3768 = vmatprep.subr.bf16.mxu1 %v3767_v3  ;;  %v3763_v12 = vpack.c.bf16 %v523_v10, %v522_v9  ;;  %3654 = vmatprep.mubr.msk.f32.mxu1 %vm531_vm0, %v518_v11  ;;  %v516_v13 = vld [vmem:[%s473_s28] sm:$0xff]  ;;  %v519_v14 = vld [vmem:[%s478_s25 + $0x8] sm:$0xff]  ;;  %v707_v31 = vld [vmem:[%s493_s24 + $0x10] sm:$0xff]  ;;  %s502_s27 = scalar_lea.vmem %s4331_s7, %s4336_s14  ;;  %s507_s17 = scalar_lea.vmem %s4332_s8, %s3925_s15 }
  0x14   : > { %3760 = vmatprep.subr.bf16.mxu0 %v3759_v7  ;;  %3770 = vmatpush3.bf16.msra.mxu1 %v3767_v3  ;;  %v517_v15 = vld [vmem:[%s473_s28 + $0x8] sm:$0xff]  ;;  %v3521_v16 = vld [vmem:[%s499_s11] ss:$0 sm:$0xff]  ;;  %v708_v32 = vld [vmem:[%s493_s24 + $0x18] sm:$0xff]  ;;  %s3856_s28 = smov 8   ;;  %s515_s22 = scalar_lea.vmem %s4334_s10, %s3928_s16 }
  0x15   : > { %3762 = vmatpush3.bf16.msra.mxu0 %v3759_v7  ;;  %3772 = vmatprep.subr.bf16.mxu1 %v3771_v8  ;;  %v3518_v17 = vld [vmem:[%s496_s18] ss:$0 sm:$0xff]  ;;  %v706_v29 = vld [vmem:[%s493_s24 + $0x8] sm:$0xff]  ;;  %v3779_v33 = vpack.c.bf16 %v708_v32, %v707_v31 }
  0x16   : > { %3764 = vmatprep.subr.bf16.mxu0 %v3763_v12  ;;  %3643 = vmatprep.mubr.msk.f32.mxu0 %vm531_vm0, %v516_v13  ;;  %v705_v28 = vld [vmem:[%s493_s24] sm:$0xff] }
  0x17   : > { %v3775_v30 = vpack.c.bf16 %v706_v29, %v705_v28 }
  0x18   : > { %3774 = vmatpush3.bf16.msra.mxu1 %v3771_v8 }
  0x19   : > { %3766 = vmatpush3.bf16.msra.mxu0 %v3763_v12  ;;  %3668 = vmatprep.subr.mxu1 %v3852_v27 }
  0x1a   : > { %3776 = vmatprep.subr.bf16.mxu0 %v3775_v30 }
  0x1b   : > { %3655 = vmatmul.mubr.msk.f32.vlgmr.msra.gmra.mrb[0].mxu1 %vm531_vm0, %v519_v14 }
  0x1c   : > { %3644 = vmatmul.mubr.msk.f32.vlgmr.msra.gmra.mrb[0].mxu0 %vm531_vm0, %v517_v15  ;;  %3670 = vmatprep.mubr.msk.f32.mxu1 %vm3853_vm1, %v3852_v27 }
  0x1d   : > { %3665 = vmatprep.mubr.msk.f32.mxu0 %vm531_vm0, %v518_v11  ;;  %3778 = vmatpush3.bf16.msra.mxu0 %v3775_v30 }
  0x1e   : > { %3780 = vmatprep.subr.bf16.mxu0 %v3779_v33 }
  0x21   : > { %3782 = vmatpush3.bf16.msra.mxu0 %v3779_v33 }
  0x22   : > { %3688 = vmatprep.subr.mxu0 %v3852_v27 }
  0x24   : > { %3666 = vmatmul.mubr.msk.f32.vlgmr.msra.gmra.mrb[2].mxu0 %vm531_vm0, %v519_v14 }
  0x25   : > { %3690 = vmatprep.mubr.msk.f32.mxu0 %vm3853_vm1, %v3852_v27 }
  0xee   : > { %v3656_v18 = vpop.f32.mrb[0].mxu1 }
  0xef   : > { %v3959_v19 = vadd.f32 %v3656_v18, %v3521_v16  ;;  %v3645_v20 = vpop.f32.mrb[0].mxu0  ;;  %v696_v21 = vpop.f32.mrb[1].mxu1 }
  0xf0   : > { %v3961_v22 = vadd.f32 %v3645_v20, %v3518_v17  ;;  %v697_v23 = vadd.f32 %v3521_v16, %v696_v21  ;;  %v604_v24 = vpop.f32.mrb[1].mxu0 }
  0xf1   : > { %v605_v25 = vadd.f32 %v3518_v17, %v604_v24 }
  0xf2   : > { %946 = vrot.lane.b32.xlu1 %v697_v23, %s3849_s19  ;;  %940 = vrot.lane.b32.xlu0 %v697_v23, %s3850_s20 }
  0xf3   : > { %v791_v26 = vmul.f32 0.35355338, %v605_v25 }
  0xf6   : > { %943 = vrot.lane.b32.xlu0 %v697_v23, %s3851_s21  ;;  %794 = vrot.lane.b32.xlu1 %v791_v26, %s3850_s20 }
  0xfa   : > { %797 = vrot.lane.b32.xlu0 %v791_v26, %s3851_s21  ;;  %800 = vrot.lane.b32.xlu1 %v791_v26, %s3849_s19 }
 0x164   : > { %v947_v41 = vpop.permute.xlu1 %946  ;;  %v941_v42 = vpop.permute.xlu0 %940 }
 0x165   : > { %v965_v45 = vcombine.low %v941_v42, %v947_v41  ;;  %v966_v46 = vcombine.high %v941_v42, %v947_v41 }
 0x167   : > { %v973_v52 = vrot.slane %v965_v45, %v3980_v44  ;;  %v980_v53 = vrot.slane %v966_v46, %v3980_v44 }
 0x168   : > { %v944_v47 = vpop.permute.xlu0 %943  ;;  %v795_v48 = vpop.permute.xlu1 %794 }
 0x169   : > { %v949_v49 = vcombine.low %v697_v23, %v944_v47  ;;  %v950_v50 = vcombine.high %v697_v23, %v944_v47 }
 0x16b   : > { %v957_v54 = vrot.slane %v949_v49, %v3980_v44  ;;  %v964_v55 = vrot.slane %v950_v50, %v3980_v44 }
 0x16c   : > { %v798_v56 = vpop.permute.xlu0 %797  ;;  %v801_v57 = vpop.permute.xlu1 %800 }
 0x16d   : > { %v981_v58 = vcombine.low %v957_v54, %v973_v52  ;;  %v982_v59 = vcombine.high %v957_v54, %v973_v52  ;;  %v997_v60 = vcombine.low %v964_v55, %v980_v53  ;;  %v998_v61 = vcombine.high %v964_v55, %v980_v53 }
 0x16e   : > { %v803_v62 = vcombine.low %v791_v26, %v798_v56  ;;  %v804_v63 = vcombine.high %v791_v26, %v798_v56  ;;  %v819_v0 = vcombine.low %v795_v48, %v801_v57  ;;  %v820_v1 = vcombine.high %v795_v48, %v801_v57 }
 0x16f   : > { %v989_v2 = vrot.slane %v981_v58, %v3982_v51  ;;  %v996_v3 = vrot.slane %v982_v59, %v3982_v51  ;;  %v1005_v4 = vrot.slane %v997_v60, %v3982_v51  ;;  %v1012_v5 = vrot.slane %v998_v61, %v3982_v51 }
 0x170   : > { %v811_v6 = vrot.slane %v803_v62, %v3980_v44  ;;  %v818_v7 = vrot.slane %v804_v63, %v3980_v44  ;;  %v827_v8 = vrot.slane %v819_v0, %v3980_v44  ;;  %v834_v9 = vrot.slane %v820_v1, %v3980_v44  ;;  %v3667_v63 = vpop.f32.mrb[2].mxu0  ;;  %v3524_v0 = vld [vmem:[%s502_s27] ss:$0 sm:$0xff] }
 0x171   : > { %v1017_v10 = vcombine.low %v989_v2, %v996_v3  ;;  %v3529_v11 = vcombine.high %v989_v2, %v996_v3  ;;  %v1033_v12 = vcombine.low %v1005_v4, %v1012_v5  ;;  %v3530_v13 = vcombine.high %v1005_v4, %v1012_v5  ;;  %v782_v2 = vpop.f32.mrb[3].mxu0 }
 0x172   : > { %v835_v14 = vcombine.low %v811_v6, %v827_v8  ;;  %v836_v15 = vcombine.high %v811_v6, %v827_v8  ;;  %v851_v16 = vcombine.low %v818_v7, %v834_v9  ;;  %v852_v17 = vcombine.high %v818_v7, %v834_v9 }
 0x173   : > { %v1024_v18 = vrot.slane %v1017_v10, %v3980_v44  ;;  %v1032_v20 = vrot.slane %v3529_v11, %v3980_v44  ;;  %v1040_v21 = vrot.slane %v1033_v12, %v3980_v44  ;;  %v1048_v23 = vrot.slane %v3530_v13, %v3980_v44 }
 0x174   : > { %v843_v24 = vrot.slane %v835_v14, %v3982_v51  ;;  %v850_v25 = vrot.slane %v836_v15, %v3982_v51  ;;  %v859_v26 = vrot.slane %v851_v16, %v3982_v51  ;;  %v866_v28 = vrot.slane %v852_v17, %v3982_v51 }
 0x175   : > { %v1049_v29 = vcombine.low %v1024_v18, %v1032_v20  ;;  %v1065_v30 = vcombine.low %v1040_v21, %v1048_v23  ;;  %v1050_v45 = vcombine.high %v1024_v18, %v1032_v20  ;;  %v1066_v46 = vcombine.high %v1040_v21, %v1048_v23 }
 0x176   : > { %v871_v31 = vcombine.low %v843_v24, %v850_v25  ;;  %v3527_v32 = vcombine.high %v843_v24, %v850_v25  ;;  %v887_v33 = vcombine.low %v859_v26, %v866_v28  ;;  %v3528_v34 = vcombine.high %v859_v26, %v866_v28 }
 0x177   : > { %v1057_v35 = vrot.slane %v1049_v29, %v3982_v51  ;;  %v1073_v36 = vrot.slane %v1065_v30, %v3982_v51  ;;  %v1064_v54 = vrot.slane %v1050_v45, %v3982_v51  ;;  %v1080_v55 = vrot.slane %v1066_v46, %v3982_v51 }
 0x178   : > { %v878_v37 = vrot.slane %v871_v31, %v3980_v44  ;;  %v886_v38 = vrot.slane %v3527_v32, %v3980_v44  ;;  %v894_v39 = vrot.slane %v887_v33, %v3980_v44  ;;  %v902_v40 = vrot.slane %v3528_v34, %v3980_v44 }
 0x179   : > { %v1081_v41 = vcombine.low %v1057_v35, %v1073_v36  ;;  %v1082_v53 = vcombine.high %v1057_v35, %v1073_v36  ;;  %v1083_v59 = vcombine.low %v1064_v54, %v1080_v55  ;;  %v1084_v61 = vcombine.high %v1064_v54, %v1080_v55 }
 0x17a   : > { %v903_v42 = vcombine.low %v878_v37, %v886_v38  ;;  %v919_v43 = vcombine.low %v894_v39, %v902_v40  ;;  %v904_v49 = vcombine.high %v878_v37, %v886_v38  ;;  %v920_v50 = vcombine.high %v894_v39, %v902_v40 }
 0x17b   : > { %3669 = vmatpush3.xpose.msk.msra.mxu1 %vm1231_vm2, %v1081_v41  ;;  %v4040_v1 = vadd.f32 %v3667_v63, %v3524_v0  ;;  %v783_v15 = vadd.f32 %v3524_v0, %v782_v2  ;;  %v4056_v16 = vmul.f32 0.35355338, %v3961_v22 }
 0x17c   : > { %3673 = vmatprep.subr.mxu1 %v3852_v27  ;;  %v911_v47 = vrot.slane %v903_v42, %v3982_v51  ;;  %v927_v48 = vrot.slane %v919_v43, %v3982_v51  ;;  %v918_v57 = vrot.slane %v904_v49, %v3982_v51  ;;  %v934_v58 = vrot.slane %v920_v50, %v3982_v51 }
 0x17e   : > { %v935_v52 = vcombine.low %v911_v47, %v927_v48  ;;  %v936_v56 = vcombine.high %v911_v47, %v927_v48  ;;  %v937_v60 = vcombine.low %v918_v57, %v934_v58  ;;  %v938_v62 = vcombine.high %v918_v57, %v934_v58 }
 0x180   : > { %3671 = vmatmul.mubr.msk.f32.vlgmr.msra.gmra.mrb[2].mxu1 %vm1231_vm2, %v935_v52 }
 0x181   : > { %3674 = vmatpush3.xpose.msk.msra.mxu1 %vm1231_vm2, %v1082_v53  ;;  %3675 = vmatprep.mubr.msk.f32.mxu1 %vm3853_vm1, %v3852_v27 }
 0x182   : > { %3678 = vmatprep.subr.mxu1 %v3852_v27 }
 0x184   : > { %3676 = vmatmul.mubr.msk.f32.vlgmr.msra.gmra.mrb[4].mxu1 %vm1231_vm2, %v936_v56 }
 0x185   : > { %3679 = vmatpush3.xpose.msk.msra.mxu1 %vm1231_vm2, %v1083_v59  ;;  %3680 = vmatprep.mubr.msk.f32.mxu1 %vm3853_vm1, %v3852_v27 }
 0x186   : > { %3683 = vmatprep.subr.mxu1 %v3852_v27 }
 0x188   : > { %3681 = vmatmul.mubr.msk.f32.vlgmr.msra.gmra.mrb[6].mxu1 %vm1231_vm2, %v937_v60 }
 0x189   : > { %3684 = vmatpush3.xpose.msk.msra.mxu1 %vm1231_vm2, %v1084_v61  ;;  %3685 = vmatprep.mubr.msk.f32.mxu1 %vm3853_vm1, %v3852_v27 }
 0x18a   : > { %3693 = vmatprep.subr.mxu1 %v3852_v27 }
 0x18c   : > { %3686 = vmatmul.mubr.msk.f32.vlgmr.msra.gmra.mrb[8].mxu1 %vm1231_vm2, %v938_v62 }
 0x18d   : > { %3695 = vmatprep.mubr.msk.f32.mxu1 %vm3853_vm1, %v3852_v27 }
 0x253   : > { %v1304_v3 = vpop.f32.mrb[2].mxu1 }
 0x254   : > { %v3672_v4 = vpop.f32.mrb[3].mxu1  ;;  %v1536_v5 = vsel %vm1231_vm2, %v1304_v3, -inf }
 0x255   : > { %1537 = vmax.xlane.f32.xlu0 %v1536_v5 }
 0x257   : > { %v1380_v6 = vpop.f32.mrb[4].mxu1 }
 0x258   : > { %v3677_v7 = vpop.f32.mrb[5].mxu1  ;;  %v1539_v8 = vsel %vm1231_vm2, %v1380_v6, -inf }
 0x259   : > { %1540 = vmax.xlane.f32.xlu1 %v1539_v8 }
 0x25b   : > { %v1456_v9 = vpop.f32.mrb[6].mxu1 }
 0x25c   : > { %v3682_v10 = vpop.f32.mrb[7].mxu1  ;;  %v1542_v11 = vsel %vm1231_vm2, %v1456_v9, -inf }
 0x25d   : > { %1543 = vmax.xlane.f32.xlu0 %v1542_v11 }
 0x25f   : > { %v1532_v12 = vpop.f32.mrb[8].mxu1 }
 0x260   : > { %v3687_v13 = vpop.f32.mrb[9].mxu1  ;;  %v1545_v14 = vsel %vm1231_vm2, %v1532_v12, -inf }
 0x261   : > { %1546 = vmax.xlane.f32.xlu0 %v1545_v14 }
 0x26a   : > { %1086 = vrot.lane.b32.xlu1 %v783_v15, %s3850_s20 }
 0x26e   : > { %1092 = vrot.lane.b32.xlu1 %v783_v15, %s3849_s19 }
 0x272   : > { %2172 = vrot.lane.b32.xlu1 %v3959_v19, %s3850_s20 }
 0x276   : > { %2178 = vrot.lane.b32.xlu1 %v3959_v19, %s3849_s19 }
 0x277   : > { %1089 = vrot.lane.b32.xlu0 %v783_v15, %s3851_s21 }
 0x27b   : > { %2175 = vrot.lane.b32.xlu0 %v3959_v19, %s3851_s21 }
 0x27f   : > { %2026 = vrot.lane.b32.xlu0 %v4056_v16, %s3850_s20 }
 0x2e2   : > { %v1538_v17 = vpop.xlane.xlu0 %1537 }
 0x2e3   : > { %v1548_v18 = vsub.f32 %v1304_v3, %v1538_v17 }
 0x2e5   : > { %v1552_v20 = vmul.f32 1.442695, %v1548_v18 }
 0x2e6   : > { %v1541_v21 = vpop.xlane.xlu1 %1540 }
 0x2e7   : > { %3809 = vpow2.f32 %v1552_v20  ;;  %v1549_v23 = vsub.f32 %v1380_v6, %v1541_v21 }
 0x2e9   : > { %v1554_v24 = vmul.f32 1.442695, %v1549_v23 }
 0x2ea   : > { %v1087_v25 = vpop.permute.xlu1 %1086  ;;  %v1544_v26 = vpop.xlane.xlu0 %1543 }
 0x2eb   : > { %3811 = vpow2.f32 %v1554_v24  ;;  %v1550_v28 = vsub.f32 %v1456_v9, %v1544_v26 }
 0x2ed   : > { %v1556_v29 = vmul.f32 1.442695, %v1550_v28 }
 0x2ee   : > { %v1093_v30 = vpop.permute.xlu1 %1092  ;;  %v1547_v31 = vpop.xlane.xlu0 %1546 }
 0x2ef   : > { %v1111_v32 = vcombine.low %v1087_v25, %v1093_v30  ;;  %v1112_v22 = vcombine.high %v1087_v25, %v1093_v30  ;;  %v1551_v33 = vsub.f32 %v1532_v12, %v1547_v31  ;;  %3813 = vpow2.f32 %v1556_v29 }
 0x2f1   : > { %v4060_v34 = vpop.eup %3809  ;;  %v1558_v35 = vmul.f32 1.442695, %v1551_v33  ;;  %v1119_v36 = vrot.slane %v1111_v32, %v3980_v44  ;;  %v1126_v39 = vrot.slane %v1112_v22, %v3980_v44 }
 0x2f2   : > { %v1090_v37 = vpop.permute.xlu0 %1089  ;;  %v1560_v38 = vsel %vm1231_vm2, %v4060_v34, 0.0  ;;  %v2173_v18 = vpop.permute.xlu1 %2172 }
 0x2f3   : > { %3815 = vpow2.f32 %v1558_v35  ;;  %v1095_v40 = vcombine.low %v783_v15, %v1090_v37  ;;  %v1096_v41 = vcombine.high %v783_v15, %v1090_v37  ;;  %1561 = vadd.xlane.f32.xlu1 %v1560_v38 }
 0x2f5   : > { %v4066_v42 = vpop.eup %3811  ;;  %v1103_v43 = vrot.slane %v1095_v40, %v3980_v44  ;;  %v1110_v45 = vrot.slane %v1096_v41, %v3980_v44 }
 0x2f6   : > { %v1563_v46 = vsel %vm1231_vm2, %v4066_v42, 0.0  ;;  %v2179_v20 = vpop.permute.xlu1 %2178  ;;  %v2176_v21 = vpop.permute.xlu0 %2175 }
 0x2f7   : > { %v1127_v47 = vcombine.low %v1103_v43, %v1119_v36  ;;  %v1128_v48 = vcombine.high %v1103_v43, %v1119_v36  ;;  %v1143_v49 = vcombine.low %v1110_v45, %v1126_v39  ;;  %v1144_v50 = vcombine.high %v1110_v45, %v1126_v39  ;;  %1564 = vadd.xlane.f32.xlu0 %v1563_v46 }
 0x2f8   : > { %v2197_v23 = vcombine.low %v2173_v18, %v2179_v20  ;;  %v2181_v24 = vcombine.low %v3959_v19, %v2176_v21  ;;  %v2198_v25 = vcombine.high %v2173_v18, %v2179_v20  ;;  %v2182_v26 = vcombine.high %v3959_v19, %v2176_v21 }
 0x2f9   : > { %v1135_v52 = vrot.slane %v1127_v47, %v3982_v51  ;;  %v1142_v53 = vrot.slane %v1128_v48, %v3982_v51  ;;  %v1151_v54 = vrot.slane %v1143_v49, %v3982_v51  ;;  %v1158_v55 = vrot.slane %v1144_v50, %v3982_v51  ;;  %v4076_v60 = vpop.eup %3813 }
 0x2fa   : > { %v1566_v3 = vsel %vm1231_vm2, %v4076_v60, 0.0  ;;  %v2205_v28 = vrot.slane %v2197_v23, %v3980_v44  ;;  %v2189_v29 = vrot.slane %v2181_v24, %v3980_v44  ;;  %v2212_v30 = vrot.slane %v2198_v25, %v3980_v44  ;;  %v2027_v32 = vpop.permute.xlu0 %2026 }
 0x2fb   : > { %v1163_v56 = vcombine.low %v1135_v52, %v1142_v53  ;;  %v3531_v57 = vcombine.high %v1135_v52, %v1142_v53  ;;  %v1179_v58 = vcombine.low %v1151_v54, %v1158_v55  ;;  %v3532_v59 = vcombine.high %v1151_v54, %v1158_v55  ;;  %1567 = vadd.xlane.f32.xlu1 %v1566_v3 }
 0x2fc   : > { %v2196_v31 = vrot.slane %v2182_v26, %v3980_v44  ;;  %v2213_v33 = vcombine.low %v2189_v29, %v2205_v28  ;;  %v2214_v35 = vcombine.high %v2189_v29, %v2205_v28 }
 0x2fd   : > { %v4078_v61 = vpop.eup %3815  ;;  %v1170_v62 = vrot.slane %v1163_v56, %v3980_v44  ;;  %v1178_v63 = vrot.slane %v3531_v57, %v3980_v44  ;;  %v1186_v0 = vrot.slane %v1179_v58, %v3980_v44  ;;  %v1194_v2 = vrot.slane %v3532_v59, %v3980_v44 }
 0x2fe   : > { %v1569_v4 = vsel %vm1231_vm2, %v4078_v61, 0.0  ;;  %v2229_v36 = vcombine.low %v2196_v31, %v2212_v30  ;;  %v2230_v37 = vcombine.high %v2196_v31, %v2212_v30  ;;  %v2221_v39 = vrot.slane %v2213_v33, %v3982_v51 }
 0x2ff   : > { %v1195_v5 = vcombine.low %v1170_v62, %v1178_v63  ;;  %v1211_v6 = vcombine.low %v1186_v0, %v1194_v2  ;;  %1570 = vadd.xlane.f32.xlu0 %v1569_v4  ;;  %v1196_v9 = vcombine.high %v1170_v62, %v1178_v63  ;;  %v1212_v10 = vcombine.high %v1186_v0, %v1194_v2 }
 0x300   : > { %v2228_v19 = vrot.slane %v2214_v35, %v3982_v51  ;;  %v2237_v40 = vrot.slane %v2229_v36, %v3982_v51  ;;  %v2244_v41 = vrot.slane %v2230_v37, %v3982_v51 }
 0x301   : > { %v1203_v7 = vrot.slane %v1195_v5, %v3982_v51  ;;  %v1219_v8 = vrot.slane %v1211_v6, %v3982_v51  ;;  %v4091_v13 = vrot.slane %v1196_v9, %v3982_v51  ;;  %v1226_v14 = vrot.slane %v1212_v10, %v3982_v51 }
 0x302   : > { %v2249_v43 = vcombine.low %v2221_v39, %v2228_v19  ;;  %v3549_v45 = vcombine.high %v2221_v39, %v2228_v19  ;;  %v2265_v46 = vcombine.low %v2237_v40, %v2244_v41  ;;  %v3550_v47 = vcombine.high %v2237_v40, %v2244_v41 }
 0x303   : > { %v1227_v11 = vcombine.low %v1203_v7, %v1219_v8  ;;  %v1228_v12 = vcombine.high %v1203_v7, %v1219_v8  ;;  %v1229_v15 = vcombine.low %v4091_v13, %v1226_v14  ;;  %v1230_v17 = vcombine.high %v4091_v13, %v1226_v14 }
 0x304   : > { %v4114_v50 = vrot.slane %v2249_v43, %v3980_v44  ;;  %v4117_v53 = vrot.slane %v3549_v45, %v3980_v44  ;;  %v4120_v54 = vrot.slane %v2265_v46, %v3980_v44  ;;  %v4123_v55 = vrot.slane %v3550_v47, %v3980_v44 }
 0x305   : > { %3689 = vmatpush3.msra.mxu0 %v1227_v11  ;;  %3694 = vmatpush3.msra.mxu1 %v1228_v12 }
 0x306   : > { %3698 = vmatprep.subr.mxu0 %v3852_v27  ;;  %3703 = vmatprep.subr.mxu1 %v3852_v27  ;;  %v2281_v59 = vcombine.low %v4114_v50, %v4117_v53  ;;  %v2297_v62 = vcombine.low %v4120_v54, %v4123_v55  ;;  %v2282_v29 = vcombine.high %v4114_v50, %v4117_v53 }
 0x308   : > { %v2305_v8 = vrot.slane %v2297_v62, %v3982_v51  ;;  %v2296_v19 = vrot.slane %v2282_v29, %v3982_v51 }
 0x30c   : > { %2029 = vrot.lane.b32.xlu1 %v4056_v16, %s3851_s21 }
 0x315   : > { %2032 = vrot.lane.b32.xlu0 %v4056_v16, %s3849_s19 }
 0x380   : > { %v1562_v22 = vpop.xlane.xlu1 %1561 }
 0x381   : > { %3817 = vrcp.f32 %v1562_v22 }
 0x384   : > { %v1565_v38 = vpop.xlane.xlu0 %1564 }
 0x385   : > { %3819 = vrcp.f32 %v1565_v38 }
 0x388   : > { %v1568_v52 = vpop.xlane.xlu1 %1567 }
 0x389   : > { %3821 = vrcp.f32 %v1568_v52 }
 0x38b   : > { %v3818_v48 = vpop.eup %3817 }
 0x38c   : > { %v1576_v49 = vmul.f32 %v3818_v48, %v4060_v34  ;;  %v1571_v56 = vpop.xlane.xlu0 %1570  ;;  %v2030_v58 = vpop.permute.xlu1 %2029 }
 0x38d   : > { %3823 = vrcp.f32 %v1571_v56  ;;  %v2035_v63 = vcombine.low %v4056_v16, %v2030_v58  ;;  %v2036_v0 = vcombine.high %v4056_v16, %v2030_v58  ;;  %v2289_v16 = vrot.slane %v2281_v59, %v3982_v51 }
 0x38e   : > { %3691 = vmatmul.mubr.msk.f32.vlgmr.msra.gmra.mrb[4].mxu0 %vm1231_vm2, %v1576_v49 }
 0x38f   : > { %v3820_v57 = vpop.eup %3819  ;;  %3699 = vmatpush3.msra.mxu0 %v1229_v15  ;;  %3700 = vmatprep.mubr.msk.f32.mxu0 %vm3853_vm1, %v3852_v27  ;;  %v2050_v5 = vrot.slane %v2036_v0, %v3980_v44  ;;  %v2313_v24 = vcombine.low %v2289_v16, %v2305_v8  ;;  %v2314_v28 = vcombine.high %v2289_v16, %v2305_v8 }
 0x390   : > { %v1577_v34 = vmul.f32 %v3820_v57, %v4066_v42  ;;  %3708 = vmatprep.subr.mxu0 %v3852_v27  ;;  %v2033_v2 = vpop.permute.xlu0 %2032  ;;  %v2043_v42 = vrot.slane %v2035_v63, %v3980_v44 }
 0x391   : > { %v2051_v3 = vcombine.low %v2027_v32, %v2033_v2  ;;  %v2052_v4 = vcombine.high %v2027_v32, %v2033_v2 }
 0x392   : > { %3696 = vmatmul.mubr.msk.f32.vlgmr.msra.gmra.mrb[10].mxu1 %vm1231_vm2, %v1577_v34 }
 0x393   : > { %3704 = vmatpush3.msra.mxu1 %v1230_v17  ;;  %3705 = vmatprep.mubr.msk.f32.mxu1 %vm3853_vm1, %v3852_v27  ;;  %v2059_v6 = vrot.slane %v2051_v3, %v3980_v44  ;;  %v2066_v7 = vrot.slane %v2052_v4, %v3980_v44  ;;  %v3822_v13 = vpop.eup %3821 }
 0x394   : > { %3713 = vmatprep.subr.mxu1 %v3852_v27  ;;  %v1578_v15 = vmul.f32 %v3822_v13, %v4076_v60 }
 0x395   : > { %v2067_v9 = vcombine.low %v2043_v42, %v2059_v6  ;;  %v2068_v10 = vcombine.high %v2043_v42, %v2059_v6  ;;  %v2083_v11 = vcombine.low %v2050_v5, %v2066_v7  ;;  %v2084_v12 = vcombine.high %v2050_v5, %v2066_v7 }
 0x396   : > { %3701 = vmatmul.mubr.msk.f32.vlgmr.msra.gmra.mrb[6].mxu0 %vm1231_vm2, %v1578_v15 }
 0x397   : > { %v3824_v14 = vpop.eup %3823  ;;  %v2075_v17 = vrot.slane %v2067_v9, %v3982_v51  ;;  %v2082_v18 = vrot.slane %v2068_v10, %v3982_v51  ;;  %v2091_v20 = vrot.slane %v2083_v11, %v3982_v51  ;;  %v2098_v23 = vrot.slane %v2084_v12, %v3982_v51  ;;  %3709 = vmatpush3.xpose.msk.msra.mxu0 %vm1231_vm2, %v2313_v24 }
 0x398   : > { %v1579_v21 = vmul.f32 %v3824_v14, %v4078_v61  ;;  %v2298_v61 = vcombine.high %v4120_v54, %v4123_v55  ;;  %3710 = vmatprep.mubr.msk.f32.mxu0 %vm3853_vm1, %v3852_v27  ;;  %3718 = vmatprep.subr.mxu0 %v3852_v27 }
 0x399   : > { %v2103_v25 = vcombine.low %v2075_v17, %v2082_v18  ;;  %v3547_v26 = vcombine.high %v2075_v17, %v2082_v18  ;;  %v2119_v60 = vcombine.low %v2091_v20, %v2098_v23  ;;  %v3548_v30 = vcombine.high %v2091_v20, %v2098_v23 }
 0x39a   : > { %3706 = vmatmul.mubr.msk.f32.vlgmr.msra.gmra.mrb[12].mxu1 %vm1231_vm2, %v1579_v21  ;;  %v2312_v40 = vrot.slane %v2298_v61, %v3982_v51 }
 0x39b   : > { %v2110_v31 = vrot.slane %v2103_v25, %v3980_v44  ;;  %v2118_v32 = vrot.slane %v3547_v26, %v3980_v44  ;;  %3714 = vmatpush3.xpose.msk.msra.mxu1 %vm1231_vm2, %v2314_v28  ;;  %v2126_v22 = vrot.slane %v2119_v60, %v3980_v44  ;;  %v2134_v33 = vrot.slane %v3548_v30, %v3980_v44 }
 0x39c   : > { %3715 = vmatprep.mubr.msk.f32.mxu1 %vm3853_vm1, %v3852_v27  ;;  %3723 = vmatprep.subr.mxu1 %v3852_v27  ;;  %v2315_v48 = vcombine.low %v2296_v19, %v2312_v40  ;;  %v2316_v49 = vcombine.high %v2296_v19, %v2312_v40 }
 0x39d   : > { %v2135_v35 = vcombine.low %v2110_v31, %v2118_v32  ;;  %v2136_v36 = vcombine.high %v2110_v31, %v2118_v32  ;;  %v2151_v37 = vcombine.low %v2126_v22, %v2134_v33  ;;  %v2152_v38 = vcombine.high %v2126_v22, %v2134_v33 }
 0x39f   : > { %v2143_v39 = vrot.slane %v2135_v35, %v3982_v51  ;;  %v2159_v41 = vrot.slane %v2151_v37, %v3982_v51  ;;  %v2150_v46 = vrot.slane %v2136_v36, %v3982_v51  ;;  %v2166_v47 = vrot.slane %v2152_v38, %v3982_v51 }
 0x3a1   : > { %v2167_v43 = vcombine.low %v2143_v39, %v2159_v41  ;;  %v2168_v45 = vcombine.high %v2143_v39, %v2159_v41  ;;  %v2169_v50 = vcombine.low %v2150_v46, %v2166_v47  ;;  %v2170_v52 = vcombine.high %v2150_v46, %v2166_v47 }
 0x3a3   : > { %3711 = vmatmul.mubr.msk.f32.vlgmr.msra.gmra.mrb[8].mxu0 %vm1231_vm2, %v2167_v43  ;;  %3716 = vmatmul.mubr.msk.f32.vlgmr.msra.gmra.mrb[14].mxu1 %vm1231_vm2, %v2168_v45 }
 0x3a4   : > { %3719 = vmatpush3.xpose.msk.msra.mxu0 %vm1231_vm2, %v2315_v48  ;;  %3724 = vmatpush3.xpose.msk.msra.mxu1 %vm1231_vm2, %v2316_v49 }
 0x3a5   : > { %3720 = vmatprep.mubr.msk.f32.mxu0 %vm3853_vm1, %v3852_v27  ;;  %3725 = vmatprep.mubr.msk.f32.mxu1 %vm3853_vm1, %v3852_v27 }
 0x3a6   : > { %3728 = vmatprep.subr.mxu0 %v3852_v27  ;;  %3733 = vmatprep.subr.mxu1 %v3852_v27 }
 0x3a7   : > { %3721 = vmatmul.mubr.msk.f32.vlgmr.msra.gmra.mrb[10].mxu0 %vm1231_vm2, %v2169_v50  ;;  %3726 = vmatmul.mubr.msk.f32.vlgmr.msra.gmra.mrb[16].mxu1 %vm1231_vm2, %v2170_v52 }
 0x3a8   : > { %3730 = vmatprep.mubr.msk.f32.mxu0 %vm3853_vm1, %v3852_v27  ;;  %3735 = vmatprep.mubr.msk.f32.mxu1 %vm3853_vm1, %v3852_v27 }
 0x461   : > { %v1649_v53 = vpop.f32.mrb[4].mxu0 }
 0x462   : > { %v3692_v54 = vpop.f32.mrb[5].mxu0 }
 0x465   : > { %v1722_v55 = vpop.f32.mrb[10].mxu1 }
 0x466   : > { %v3697_v56 = vpop.f32.mrb[11].mxu1 }
 0x469   : > { %v1795_v57 = vpop.f32.mrb[6].mxu0 }
 0x46a   : > { %v1872_v34 = vcombine.low %v1649_v53, %v1795_v57  ;;  %v1873_v58 = vcombine.high %v1649_v53, %v1795_v57  ;;  %v3702_v59 = vpop.f32.mrb[7].mxu0 }
 0x46c   : > { %v1880_v3 = vrot.slane %v1872_v34, %v3980_v44  ;;  %v1887_v4 = vrot.slane %v1873_v58, %v3980_v44 }
 0x46d   : > { %v1868_v62 = vpop.f32.mrb[12].mxu1 }
 0x46e   : > { %v1888_v63 = vcombine.low %v1722_v55, %v1868_v62  ;;  %v1889_v0 = vcombine.high %v1722_v55, %v1868_v62  ;;  %v3707_v2 = vpop.f32.mrb[13].mxu1 }
 0x470   : > { %v1896_v42 = vrot.slane %v1888_v63, %v3980_v44  ;;  %v1903_v5 = vrot.slane %v1889_v0, %v3980_v44 }
 0x472   : > { %v1904_v6 = vcombine.low %v1880_v3, %v1896_v42  ;;  %v1905_v7 = vcombine.high %v1880_v3, %v1896_v42  ;;  %v1920_v16 = vcombine.low %v1887_v4, %v1903_v5  ;;  %v1921_v8 = vcombine.high %v1887_v4, %v1903_v5 }
 0x474   : > { %v1912_v9 = vrot.slane %v1904_v6, %v3982_v51  ;;  %v1919_v10 = vrot.slane %v1905_v7, %v3982_v51  ;;  %v1928_v11 = vrot.slane %v1920_v16, %v3982_v51  ;;  %v1935_v12 = vrot.slane %v1921_v8, %v3982_v51 }
 0x476   : > { %v1940_v13 = vcombine.low %v1912_v9, %v1919_v10  ;;  %v3545_v14 = vcombine.high %v1912_v9, %v1919_v10  ;;  %v1956_v15 = vcombine.low %v1928_v11, %v1935_v12  ;;  %v3546_v17 = vcombine.high %v1928_v11, %v1935_v12  ;;  %v2535_v18 = vpop.f32.mrb[8].mxu0  ;;  %v2611_v20 = vpop.f32.mrb[14].mxu1 }
 0x477   : > { %v3712_v21 = vpop.f32.mrb[9].mxu0  ;;  %v3717_v23 = vpop.f32.mrb[15].mxu1  ;;  %v2767_v24 = vsel %vm1231_vm2, %v2535_v18, -inf  ;;  %v2770_v25 = vsel %vm1231_vm2, %v2611_v20, -inf }
 0x478   : > { %v1947_v26 = vrot.slane %v1940_v13, %v3980_v44  ;;  %v1955_v28 = vrot.slane %v3545_v14, %v3980_v44  ;;  %2768 = vmax.xlane.f32.xlu1 %v2767_v24  ;;  %2771 = vmax.xlane.f32.xlu0 %v2770_v25  ;;  %v1963_v29 = vrot.slane %v1956_v15, %v3980_v44 }
 0x479   : > { %v1971_v60 = vrot.slane %v3546_v17, %v3980_v44 }
 0x47a   : > { %v1972_v30 = vcombine.low %v1947_v26, %v1955_v28  ;;  %v1973_v61 = vcombine.high %v1947_v26, %v1955_v28  ;;  %v2687_v31 = vpop.f32.mrb[10].mxu0  ;;  %v2763_v32 = vpop.f32.mrb[16].mxu1 }
 0x47b   : > { %v1988_v22 = vcombine.low %v1963_v29, %v1971_v60  ;;  %v1989_v33 = vcombine.high %v1963_v29, %v1971_v60  ;;  %v3722_v35 = vpop.f32.mrb[11].mxu0  ;;  %v3727_v36 = vpop.f32.mrb[17].mxu1  ;;  %v2773_v37 = vsel %vm1231_vm2, %v2687_v31, -inf  ;;  %v2776_v38 = vsel %vm1231_vm2, %v2763_v32, -inf }
 0x47c   : > { %v4209_v39 = vrot.slane %v1972_v30, %v3982_v51  ;;  %v1987_v19 = vrot.slane %v1973_v61, %v3982_v51  ;;  %2774 = vmax.xlane.f32.xlu0 %v2773_v37  ;;  %2777 = vmax.xlane.f32.xlu1 %v2776_v38 }
 0x47d   : > { %v4213_v40 = vrot.slane %v1988_v22, %v3982_v51  ;;  %v2003_v41 = vrot.slane %v1989_v33, %v3982_v51 }
 0x47f   : > { %v2005_v43 = vcombine.high %v4209_v39, %v4213_v40  ;;  %v2006_v45 = vcombine.low %v1987_v19, %v2003_v41  ;;  %v2007_v46 = vcombine.high %v1987_v19, %v2003_v41  ;;  %v2004_v47 = vcombine.low %v4209_v39, %v4213_v40  ;;  %v3254_v39 = vld [vmem:[%s507_s17] sm:$0xff]  ;;  %v3255_v40 = vld [vmem:[%s507_s17 + $0x8] sm:$0xff] }
 0x505   : > { %v2769_v48 = vpop.xlane.xlu1 %2768  ;;  %v2772_v49 = vpop.xlane.xlu0 %2771 }
 0x506   : > { %v2779_v50 = vsub.f32 %v2535_v18, %v2769_v48  ;;  %v2780_v52 = vsub.f32 %v2611_v20, %v2772_v49 }
 0x508   : > { %v2783_v53 = vmul.f32 1.442695, %v2779_v50  ;;  %v2785_v54 = vmul.f32 1.442695, %v2780_v52 }
 0x509   : > { %v2775_v55 = vpop.xlane.xlu0 %2774  ;;  %v2778_v2 = vpop.xlane.xlu1 %2777 }
 0x50a   : > { %3825 = vpow2.f32 %v2783_v53  ;;  %v2781_v56 = vsub.f32 %v2687_v31, %v2775_v55  ;;  %v2782_v3 = vsub.f32 %v2763_v32, %v2778_v2 }
 0x50b   : > { %3827 = vpow2.f32 %v2785_v54 }
 0x50c   : > { %v2787_v57 = vmul.f32 1.442695, %v2781_v56  ;;  %v2789_v4 = vmul.f32 1.442695, %v2782_v3 }
 0x50e   : > { %3829 = vpow2.f32 %v2787_v57 }
 0x50f   : > { %3831 = vpow2.f32 %v2789_v4 }
 0x514   : > { %v4220_v34 = vpop.eup %3825 }
 0x515   : > { %v4222_v58 = vpop.eup %3827  ;;  %v2791_v59 = vsel %vm1231_vm2, %v4220_v34, 0.0 }
 0x516   : > { %2792 = vadd.xlane.f32.xlu0 %v2791_v59  ;;  %v2794_v62 = vsel %vm1231_vm2, %v4222_v58, 0.0 }
 0x517   : > { %2795 = vadd.xlane.f32.xlu1 %v2794_v62 }
 0x518   : > { %v4228_v63 = vpop.eup %3829 }
 0x519   : > { %v2797_v0 = vsel %vm1231_vm2, %v4228_v63, 0.0  ;;  %v4237_v42 = vpop.eup %3831 }
 0x51a   : > { %2798 = vadd.xlane.f32.xlu0 %v2797_v0  ;;  %v2800_v5 = vsel %vm1231_vm2, %v4237_v42, 0.0 }
 0x528   : > { %2321 = vrot.lane.b32.xlu1 %v4040_v1, %s3851_s21 }
 0x530   : > { %2318 = vrot.lane.b32.xlu0 %v4040_v1, %s3850_s20 }
 0x534   : > { %2009 = vrot.lane.b32.xlu0 %v2005_v43, %s3856_s28 }
 0x54c   : > { %2801 = vadd.xlane.f32.xlu1 %v2800_v5 }
 0x55d   : > { %2324 = vrot.lane.b32.xlu1 %v4040_v1, %s3849_s19  ;;  %s510_s19 = scalar_lea.vmem %s4333_s9, %s4336_s14 }
 0x561   : > { %2013 = vrot.lane.b32.xlu1 %v2006_v45, %s3857_s29 }
 0x565   : > { %2017 = vrot.lane.b32.xlu1 %v2007_v46, %s3858_s30 }
 0x5a3   : > { %v2793_v7 = vpop.xlane.xlu0 %2792 }
 0x5a4   : > { %v2796_v6 = vpop.xlane.xlu1 %2795  ;;  %3833 = vrcp.f32 %v2793_v7 }
 0x5a5   : > { %3835 = vrcp.f32 %v2796_v6 }
 0x5a7   : > { %v2799_v8 = vpop.xlane.xlu0 %2798 }
 0x5a8   : > { %v2322_v16 = vpop.permute.xlu1 %2321  ;;  %3837 = vrcp.f32 %v2799_v8 }
 0x5a9   : > { %v2327_v10 = vcombine.low %v4040_v1, %v2322_v16  ;;  %v2328_v11 = vcombine.high %v4040_v1, %v2322_v16 }
 0x5ab   : > { %v2319_v12 = vpop.permute.xlu0 %2318  ;;  %v2335_v17 = vrot.slane %v2327_v10, %v3980_v44  ;;  %v2342_v18 = vrot.slane %v2328_v11, %v3980_v44 }
 0x5ae   : > { %v3834_v37 = vpop.eup %3833 }
 0x5af   : > { %v3836_v45 = vpop.eup %3835  ;;  %v2807_v57 = vmul.f32 %v3834_v37, %v4220_v34  ;;  %v2010_v62 = vpop.permute.xlu0 %2009 }
 0x5b0   : > { %v2808_v59 = vmul.f32 %v3836_v45, %v4222_v58  ;;  %v2020_v58 = vsel %vm1231_vm2, %v2004_v47, %v2010_v62  ;;  %v3783_v47 = vpack.c.bf16 %v3255_v40, %v3254_v39 }
 0x5b2   : > { %v3838_v50 = vpop.eup %3837 }
 0x5b3   : > { %v2809_v34 = vmul.f32 %v3838_v50, %v4228_v63 }
 0x5d9   : > { %v2802_v9 = vpop.xlane.xlu1 %2801 }
 0x5da   : > { %3839 = vrcp.f32 %v2802_v9 }
 0x5dd   : > { %v2325_v13 = vpop.permute.xlu1 %2324 }
 0x5de   : > { %v2343_v14 = vcombine.low %v2319_v12, %v2325_v13  ;;  %v2344_v15 = vcombine.high %v2319_v12, %v2325_v13 }
 0x5e0   : > { %v2351_v20 = vrot.slane %v2343_v14, %v3980_v44  ;;  %v2358_v21 = vrot.slane %v2344_v15, %v3980_v44 }
 0x5e1   : > { %v2014_v46 = vpop.permute.xlu1 %2013 }
 0x5e2   : > { %v2359_v23 = vcombine.low %v2335_v17, %v2351_v20  ;;  %v2360_v24 = vcombine.high %v2335_v17, %v2351_v20  ;;  %v2375_v25 = vcombine.low %v2342_v18, %v2358_v21  ;;  %v2376_v26 = vcombine.high %v2342_v18, %v2358_v21 }
 0x5e3   : > { %v2022_v5 = vsel %vm2021_vm3, %v2020_v58, %v2014_v46 }
 0x5e4   : > { %v2367_v1 = vrot.slane %v2359_v23, %v3982_v51  ;;  %v2374_v28 = vrot.slane %v2360_v24, %v3982_v51  ;;  %v2383_v29 = vrot.slane %v2375_v25, %v3982_v51  ;;  %v2390_v60 = vrot.slane %v2376_v26, %v3982_v51  ;;  %v3840_v56 = vpop.eup %3839  ;;  %v3256_v26 = vld [vmem:[%s507_s17 + $0x10] sm:$0xff] }
 0x5e5   : > { %v2018_v3 = vpop.permute.xlu1 %2017  ;;  %v2810_v4 = vmul.f32 %v3840_v56, %v4237_v42 }
 0x5e6   : > { %v2395_v30 = vcombine.low %v2367_v1, %v2374_v28  ;;  %v3551_v61 = vcombine.high %v2367_v1, %v2374_v28  ;;  %v2411_v31 = vcombine.low %v2383_v29, %v2390_v60  ;;  %v3552_v32 = vcombine.high %v2383_v29, %v2390_v60  ;;  %v3257_v1 = vld [vmem:[%s507_s17 + $0x18] sm:$0xff] }
 0x5e7   : > { %v2024_v6 = vsel %vm2023_vm4, %v2022_v5, %v2018_v3 }
 0x5e8   : > { %v2402_v22 = vrot.slane %v2395_v30, %v3980_v44  ;;  %v2410_v33 = vrot.slane %v3551_v61, %v3980_v44  ;;  %v2418_v35 = vrot.slane %v2411_v31, %v3980_v44  ;;  %v2426_v36 = vrot.slane %v3552_v32, %v3980_v44 }
 0x5e9   : > { %v3787_v61 = vpack.c.bf16 %v3257_v1, %v3256_v26 }
 0x5ea   : > { %v2427_v38 = vcombine.low %v2402_v22, %v2410_v33  ;;  %v2443_v19 = vcombine.low %v2418_v35, %v2426_v36  ;;  %v2428_v41 = vcombine.high %v2402_v22, %v2410_v33  ;;  %v2444_v43 = vcombine.high %v2418_v35, %v2426_v36 }
 0x5ec   : > { %v2435_v48 = vrot.slane %v2427_v38, %v3982_v51  ;;  %v2451_v49 = vrot.slane %v2443_v19, %v3982_v51  ;;  %v2442_v52 = vrot.slane %v2428_v41, %v3982_v51  ;;  %v2458_v53 = vrot.slane %v2444_v43, %v3982_v51 }
 0x5ee   : > { %v2459_v54 = vcombine.low %v2435_v48, %v2451_v49  ;;  %v2460_v55 = vcombine.high %v2435_v48, %v2451_v49  ;;  %v2461_v0 = vcombine.low %v2442_v52, %v2458_v53  ;;  %v2462_v2 = vcombine.high %v2442_v52, %v2458_v53 }
 0x5f0   : > { %3729 = vmatpush3.msra.mxu0 %v2459_v54  ;;  %3734 = vmatpush3.msra.mxu1 %v2460_v55 }
 0x5f1   : > { %3731 = vmatmul.mubr.msk.f32.vlgmr.msra.gmra.mrb[12].mxu0 %vm1231_vm2, %v2807_v57  ;;  %3736 = vmatmul.mubr.msk.f32.vlgmr.msra.gmra.mrb[18].mxu1 %vm1231_vm2, %v2808_v59 }
 0x5f2   : > { %3738 = vmatprep.subr.mxu0 %v3852_v27  ;;  %3743 = vmatprep.subr.mxu1 %v3852_v27 }
 0x5f3   : > { %3739 = vmatpush3.msra.mxu0 %v2461_v0  ;;  %3744 = vmatpush3.msra.mxu1 %v2462_v2  ;;  %v3567_v0 = vld [vmem:[%s510_s19] ss:$0 sm:$0xff] }
 0x5f4   : > { %3740 = vmatprep.mubr.msk.f32.mxu0 %vm3853_vm1, %v3852_v27  ;;  %3745 = vmatprep.mubr.msk.f32.mxu1 %vm3853_vm1, %v3852_v27 }
 0x5f5   : > { %3741 = vmatmul.mubr.msk.f32.vlgmr.msra.gmra.mrb[14].mxu0 %vm1231_vm2, %v2809_v34  ;;  %3746 = vmatmul.mubr.msk.f32.vlgmr.msra.gmra.mrb[20].mxu1 %vm1231_vm2, %v2810_v4 }
 0x5f6   : > { %3756 = vmatprep.mubr.msk.f32.mxu0 %vm531_vm0, %v2024_v6  ;;  %3784 = vmatprep.subr.bf16.mxu0 %v3783_v47 }
 0x5f7   : > { %3786 = vmatpush3.bf16.msra.mxu0 %v3783_v47 }
 0x5f8   : > { %3788 = vmatprep.subr.bf16.mxu0 %v3787_v61 }
 0x5fb   : > { %3790 = vmatpush3.bf16.msra.mxu0 %v3787_v61 }
 0x6c4   : > { %v2880_v63 = vpop.f32.mrb[12].mxu0  ;;  %v2953_v42 = vpop.f32.mrb[18].mxu1 }
 0x6c5   : > { %v3732_v27 = vpop.f32.mrb[13].mxu0  ;;  %v3737_v7 = vpop.f32.mrb[19].mxu1 }
 0x6c8   : > { %v3026_v16 = vpop.f32.mrb[14].mxu0  ;;  %v3099_v8 = vpop.f32.mrb[20].mxu1 }
 0x6c9   : > { %v3103_v9 = vcombine.low %v2880_v63, %v3026_v16  ;;  %v3104_v10 = vcombine.high %v2880_v63, %v3026_v16  ;;  %v3119_v11 = vcombine.low %v2953_v42, %v3099_v8  ;;  %v3120_v12 = vcombine.high %v2953_v42, %v3099_v8  ;;  %v3742_v13 = vpop.f32.mrb[15].mxu0  ;;  %v3747_v14 = vpop.f32.mrb[21].mxu1 }
 0x6cb   : > { %v3111_v15 = vrot.slane %v3103_v9, %v3980_v44  ;;  %v3118_v17 = vrot.slane %v3104_v10, %v3980_v44  ;;  %v3127_v18 = vrot.slane %v3119_v11, %v3980_v44  ;;  %v3134_v20 = vrot.slane %v3120_v12, %v3980_v44 }
 0x6cd   : > { %v3135_v21 = vcombine.low %v3111_v15, %v3127_v18  ;;  %v3136_v23 = vcombine.high %v3111_v15, %v3127_v18  ;;  %v3151_v24 = vcombine.low %v3118_v17, %v3134_v20  ;;  %v3152_v25 = vcombine.high %v3118_v17, %v3134_v20 }
 0x6cf   : > { %v3143_v28 = vrot.slane %v3135_v21, %v3982_v51  ;;  %v3150_v29 = vrot.slane %v3136_v23, %v3982_v51  ;;  %v3159_v60 = vrot.slane %v3151_v24, %v3982_v51  ;;  %v3166_v30 = vrot.slane %v3152_v25, %v3982_v51 }
 0x6d1   : > { %v3171_v31 = vcombine.low %v3143_v28, %v3150_v29  ;;  %v3565_v32 = vcombine.high %v3143_v28, %v3150_v29  ;;  %v3187_v22 = vcombine.low %v3159_v60, %v3166_v30  ;;  %v3566_v33 = vcombine.high %v3159_v60, %v3166_v30 }
 0x6d3   : > { %v3178_v35 = vrot.slane %v3171_v31, %v3980_v44  ;;  %v3186_v36 = vrot.slane %v3565_v32, %v3980_v44  ;;  %v3194_v37 = vrot.slane %v3187_v22, %v3980_v44  ;;  %v3202_v38 = vrot.slane %v3566_v33, %v3980_v44 }
 0x6d5   : > { %v3204_v19 = vcombine.high %v3178_v35, %v3186_v36  ;;  %v3220_v41 = vcombine.high %v3194_v37, %v3202_v38  ;;  %v3203_v43 = vcombine.low %v3178_v35, %v3186_v36  ;;  %v3219_v45 = vcombine.low %v3194_v37, %v3202_v38 }
 0x6d7   : > { %v3218_v46 = vrot.slane %v3204_v19, %v3982_v51  ;;  %v3234_v48 = vrot.slane %v3220_v41, %v3982_v51  ;;  %v3211_v49 = vrot.slane %v3203_v43, %v3982_v51  ;;  %v3227_v50 = vrot.slane %v3219_v45, %v3982_v51 }
 0x6d9   : > { %v3238_v52 = vcombine.high %v3218_v46, %v3234_v48  ;;  %v3236_v53 = vcombine.high %v3211_v49, %v3227_v50  ;;  %v3237_v54 = vcombine.low %v3218_v46, %v3234_v48  ;;  %v3235_v55 = vcombine.low %v3211_v49, %v3227_v50 }
 0x6db   : > { %3248 = vrot.lane.b32.xlu1 %v3238_v52, %s3858_s30  ;;  %3240 = vrot.lane.b32.xlu0 %v3236_v53, %s3856_s28 }
 0x6df   : > { %3244 = vrot.lane.b32.xlu0 %v3237_v54, %s3857_s29 }
 0x74d   : > { %v3241_v44 = vpop.permute.xlu0 %3240  ;;  %v3249_v59 = vpop.permute.xlu1 %3248 }
 0x74e   : > { %v3251_v56 = vsel %vm1231_vm2, %v3235_v55, %v3241_v44 }
 0x751   : > { %v3245_v57 = vpop.permute.xlu0 %3244 }
 0x752   : > { %v3252_v62 = vsel %vm2021_vm3, %v3251_v56, %v3245_v57 }
 0x753   : > { %v3253_v51 = vsel %vm2023_vm4, %v3252_v62, %v3249_v59 }
 0x754   : > { %3757 = vmatmul.mubr.msk.f32.vlgmr.msra.gmra.mrb[16].mxu0 %vm531_vm0, %v3253_v51 }
 0x827   : > { %v3758_v2 = vpop.f32.mrb[16].mxu0 }
 0x828   : > { %v3343_v3 = vadd.f32 %v3758_v2, %v3567_v0  ;;  %v3337_v34 = vpop.f32.mrb[17].mxu0 }
 0x829   : > { %v3338_v58 = vadd.f32 %v3567_v0, %v3337_v34 }
 0x82a   : > { %3347 = vst.msk [vmem:[%s515_s22 + $0x8] sm:$0xff] %vm531_vm0, %v3343_v3 }
 0x82b   : > { %3346 = vst.msk [vmem:[%s515_s22] sm:$0xff] %vm531_vm0, %v3338_v58 }
 0x82c PF: > { %s20_s13 = sadd.s32 1, %s3847_s13  }
 0x82d   : > { %p17_p4 = scmp.ge.s32.totalorder %s20_s13, 4  }
 0x82f   :  { %19 = sbr.rel (!%p17_p4) target bundleno = 1 (0x1), region = 117 }

</bundles_post_ra>
